<compile_context>
chip_gen: v6e
topology: v6e:2x2x1
jax: 0.10.0
libtpu: 0.0.40
codegen_flags: <defaults>
</compile_context>

<pallas_src>
import jax
import jax.numpy as jnp
from jax.experimental import pallas as pl
from jax.experimental.pallas import tpu as pltpu


def _sign_train_kernel(seed_ref, x_ref, o_ref):
    """Stochastic binarization with a stateless hash PRNG (VPU-only ops)."""
    tr, tc = x_ref.shape  # static block shape, e.g. (2048, 128)

    # Global element index of each lane in this block (distinct per block,
    # so no extra program_id mixing is needed for decorrelation).
    base = pl.program_id(0) * (tr * tc)
    rows = jax.lax.broadcasted_iota(jnp.int32, (tr, tc), 0)
    cols = jax.lax.broadcasted_iota(jnp.int32, (tr, tc), 1)
    idx = base + rows * tc + cols

    # lowbias32-style integer hash of (index, seed) -> uniform u32.
    seed_u32 = seed_ref[0].astype(jnp.uint32)
    h = idx.astype(jnp.uint32) + seed_u32 * jnp.uint32(0x9E3779B9)
    h = h ^ (h >> jnp.uint32(16))
    h = h * jnp.uint32(0x7FEB352D)
    h = h ^ (h >> jnp.uint32(15))
    h = h * jnp.uint32(0x846CA68B)
    h = h ^ (h >> jnp.uint32(16))

    # 23 high-quality bits -> uniform float32 in [0, 1).
    prob = (h >> jnp.uint32(9)).astype(jnp.int32).astype(jnp.float32)
    prob = prob * jnp.float32(1.0 / (1 << 23))

    x = x_ref[...].astype(jnp.float32)
    out = jnp.where((1.0 - x) * 0.5 <= prob,
                    jnp.float32(1.0), jnp.float32(-1.0))
    o_ref[...] = out.astype(o_ref.dtype)


def _sign_eval_kernel(x_ref, o_ref):
    o_ref[...] = jnp.sign(x_ref[...].astype(jnp.float32)).astype(o_ref.dtype)


def sign_pallas(x, *, is_training=True, seed=0, block_rows=2048):
    """Pallas equivalent of Sign()(x) with module.training == is_training."""
    orig_shape = x.shape
    dtype = x.dtype
    flat = x.reshape(-1)
    n = flat.shape[0]

    # Lane padding only when needed (avoids an extra HBM round trip otherwise).
    pad = (-n) % 128
    if pad:
        flat = jnp.pad(flat, (0, pad))
    rows = flat.shape[0] // 128
    x2d = flat.reshape(rows, 128)  # lane-dense slab

    # Row tile: ~1 MiB f32 per buffer (2048 x 128 x 4B); if the whole slab is
    # smaller than one tile, use the full extent (satisfies the (8,128) rule
    # via "block == full array dims"). Kept small enough that in+out tiles,
    # each double-buffered, stay far under v7x's 64 MiB VMEM.
    tr = rows if rows <= block_rows else block_rows
    grid = (pl.cdiv(rows, tr),)
    cparams = pltpu.CompilerParams(dimension_semantics=("parallel",))

    if is_training:
        seed_arr = jnp.asarray([seed], dtype=jnp.int32)
        out2d = pl.pallas_call(
            _sign_train_kernel,
            out_shape=jax.ShapeDtypeStruct((rows, 128), dtype),
            grid_spec=pltpu.PrefetchScalarGridSpec(
                num_scalar_prefetch=1,          # seed lands in SMEM
                grid=grid,
                in_specs=[pl.BlockSpec((tr, 128), lambda i, s: (i, 0))],
                out_specs=pl.BlockSpec((tr, 128), lambda i, s: (i, 0)),
            ),
            compiler_params=cparams,
        )(seed_arr, x2d)
    else:
        out2d = pl.pallas_call(
            _sign_eval_kernel,
            out_shape=jax.ShapeDtypeStruct((rows, 128), dtype),
            grid=grid,
            in_specs=[pl.BlockSpec((tr, 128), lambda i: (i, 0))],
            out_specs=pl.BlockSpec((tr, 128), lambda i: (i, 0)),
            compiler_params=cparams,
        )(x2d)

    out = out2d.reshape(-1)
    if pad:
        out = out[:n]
    return out.reshape(orig_shape)


if __name__ == "__main__":
    key = jax.random.PRNGKey(0)
    # NCHW, like the binarizer bottleneck this module sits after (values in (-1,1)).
    x = jax.random.uniform(key, (2, 4, 16, 16), dtype=jnp.float32,
                           minval=-1.0, maxval=1.0)

    # Training path: stochastic +/-1.
    y_train = sign_pallas(x, is_training=True, seed=1234)
    y_train = jax.block_until_ready(y_train)
    assert y_train.shape == x.shape and y_train.dtype == x.dtype
    assert bool(jnp.all(jnp.abs(y_train) == 1.0))
    # Loose sanity check on the stochastic binarization rate
    # (expected fraction of +1 is mean((1+x)/2) ~ 0.5 for this input).
    frac_pos = float(jnp.mean((y_train > 0).astype(jnp.float32)))
    assert 0.35 < frac_pos < 0.65, frac_pos

    # Eval path: deterministic sign, check against pure-JAX reference.
    y_eval = sign_pallas(x, is_training=False)
    y_eval = jax.block_until_ready(y_eval)
    assert bool(jnp.all(y_eval == jnp.sign(x)))

    print("KERNEL_OK")
</pallas_src>

<mosaic_0001>
module attributes {stable_mosaic.version = 11 : i64} {
  func.func @_sign_train_kernel(%arg0: i32, %arg1: memref<1xi32, #tpu.memory_space<smem>>, %arg2: memref<16x128xf32, #tpu.memory_space<vmem>>, %arg3: memref<16x128xf32, #tpu.memory_space<vmem>>) attributes {dimension_semantics = [#tpu.dimension_semantics<parallel>], iteration_bounds = array<i64: 1>, scalar_prefetch = 1 : i64, scratch_operands = 0 : i64, tpu.core_type = #tpu.core_type<tc>, window_params = [{transform_indices = @transform_0, window_bounds = array<i64: 16, 128>}, {transform_indices = @transform_1, window_bounds = array<i64: 16, 128>}]} {
    %c2048_i32 = arith.constant 2048 : i32
    %0 = arith.muli %arg0, %c2048_i32 : i32
    %1 = tpu.iota {dimensions = array<i32: 0>} : vector<16x128xi32>
    %2 = tpu.iota {dimensions = array<i32: 1>} : vector<16x128xi32>
    %c128_i32 = arith.constant 128 : i32
    %3 = vector.broadcast %c128_i32 : i32 to vector<16x128xi32>
    %4 = arith.muli %1, %3 : vector<16x128xi32>
    %5 = vector.broadcast %0 : i32 to vector<16x128xi32>
    %6 = arith.addi %5, %4 : vector<16x128xi32>
    %7 = arith.addi %6, %2 : vector<16x128xi32>
    %c0 = arith.constant 0 : index
    %8 = memref.load %arg1[%c0] : memref<1xi32, #tpu.memory_space<smem>>
    %c-1640531527_i32 = arith.constant -1640531527 : i32
    %9 = arith.muli %8, %c-1640531527_i32 : i32
    %10 = vector.broadcast %9 : i32 to vector<16x128xi32>
    %11 = arith.addi %7, %10 : vector<16x128xi32>
    %c16_i32 = arith.constant 16 : i32
    %12 = vector.broadcast %c16_i32 : i32 to vector<16x128xi32>
    %13 = arith.shrui %11, %12 : vector<16x128xi32>
    %14 = arith.xori %11, %13 : vector<16x128xi32>
    %c2146121005_i32 = arith.constant 2146121005 : i32
    %15 = vector.broadcast %c2146121005_i32 : i32 to vector<16x128xi32>
    %16 = arith.muli %14, %15 : vector<16x128xi32>
    %c15_i32 = arith.constant 15 : i32
    %17 = vector.broadcast %c15_i32 : i32 to vector<16x128xi32>
    %18 = arith.shrui %16, %17 : vector<16x128xi32>
    %19 = arith.xori %16, %18 : vector<16x128xi32>
    %c-2073254261_i32 = arith.constant -2073254261 : i32
    %20 = vector.broadcast %c-2073254261_i32 : i32 to vector<16x128xi32>
    %21 = arith.muli %19, %20 : vector<16x128xi32>
    %c16_i32_0 = arith.constant 16 : i32
    %22 = vector.broadcast %c16_i32_0 : i32 to vector<16x128xi32>
    %23 = arith.shrui %21, %22 : vector<16x128xi32>
    %24 = arith.xori %21, %23 : vector<16x128xi32>
    %c9_i32 = arith.constant 9 : i32
    %25 = vector.broadcast %c9_i32 : i32 to vector<16x128xi32>
    %26 = arith.shrui %24, %25 : vector<16x128xi32>
    %27 = arith.sitofp %26 : vector<16x128xi32> to vector<16x128xf32>
    %cst = arith.constant 1.1920929E-7 : f32
    %28 = vector.broadcast %cst : f32 to vector<16x128xf32>
    %29 = arith.mulf %27, %28 : vector<16x128xf32>
    %c0_1 = arith.constant 0 : index
    %c0_2 = arith.constant 0 : index
    %30 = vector.load %arg2[%c0_1, %c0_2] : memref<16x128xf32, #tpu.memory_space<vmem>>, vector<16x128xf32>
    %cst_3 = arith.constant 1.000000e+00 : f32
    %31 = vector.broadcast %cst_3 : f32 to vector<16x128xf32>
    %32 = arith.subf %31, %30 : vector<16x128xf32>
    %cst_4 = arith.constant 5.000000e-01 : f32
    %33 = vector.broadcast %cst_4 : f32 to vector<16x128xf32>
    %34 = arith.mulf %32, %33 : vector<16x128xf32>
    %35 = arith.cmpf ole, %34, %29 : vector<16x128xf32>
    %cst_5 = arith.constant 1.000000e+00 : f32
    %cst_6 = arith.constant -1.000000e+00 : f32
    %36 = vector.broadcast %cst_5 : f32 to vector<16x128xf32>
    %37 = vector.broadcast %cst_6 : f32 to vector<16x128xf32>
    %38 = arith.select %35, %36, %37 : vector<16x128xi1>, vector<16x128xf32>
    %c0_7 = arith.constant 0 : index
    %c0_8 = arith.constant 0 : index
    %39 = vector.load %arg3[%c0_7, %c0_8] : memref<16x128xf32, #tpu.memory_space<vmem>>, vector<16x128xf32>
    tpu.vector_store %arg3[%c0_7, %c0_8], %38 {strides = array<i32>} : memref<16x128xf32, #tpu.memory_space<vmem>>, vector<16x128xf32>,
    return
  }
  func.func @transform_0(%arg0: i32, %arg1: memref<1xi32, #tpu.memory_space<smem>>) -> (i32, i32) {
    %c0_i32 = arith.constant 0 : i32
    %c0_i32_0 = arith.constant 0 : i32
    return %arg0, %c0_i32 : i32, i32
  }
  func.func @transform_1(%arg0: i32, %arg1: memref<1xi32, #tpu.memory_space<smem>>) -> (i32, i32) {
    %c0_i32 = arith.constant 0 : i32
    %c0_i32_0 = arith.constant 0 : i32
    return %arg0, %c0_i32 : i32, i32
  }
}

</mosaic_0001>

<bundles_post_ra>
// kernel: tpu_custom_call.1
= control target key start
LH: loop header
LB: loop body
LE: loop exit
PB: predicated region body
PF: predicated region fallthrough
CT: control target
= control target key end

     0   :  { %8 = vsyncpa [#allocation5], 0  ;;  %s178_s0 = inlined_call_operand.<no memory space> [shape: s32[1], index: 0, kind: input, shape index: {}]   ;;  %s179_s1 = inlined_call_operand.hbm [shape: f32[16,128], index: 1, kind: input, shape index: {}]   ;;  %s180_s2 = inlined_call_operand.hbm [shape: f32[16,128], index: 2, kind: output, shape index: {}]  }
   0x1   :  { %9 = vsyncpa [#allocation6], 0  ;;  %s143_s9 = smov [#allocation4]  }
   0x2   :  { %s15_s10 = sshll.u32 %s143_s9, 4  ;;  %s16_s10 = int_to_ptr.vmem [resolvable:$true] %s15_s10 }
   0x3   :  { %s107_s11 = scalar_lea.vmem %s16_s10, 256  ;;  %p112_p1 = scmp.lt.s32.totalorder %s16_s10, %s16_s10 }
   0x4   :  { %p108_p0 = scmp.ne.s32.totalorder %s16_s10, %s107_s11  ;;  %p113_p2 = scmp.lt.s32.totalorder %s107_s11, %s107_s11 }
   0x6   :  { %p114_p3 = por %p113_p2, %p112_p1 }
   0x8   :  { %p115_p4 = pnand %p114_p3, %p108_p0 }
   0xa   :  { %118 = shalt.err (!%p115_p4)
}
   0xb   :  { %s144_s12 = smov 128   ;;  %s145_s13 = smov 8  }
   0xc   :  { %21 = dma.hbm_to_vmem [thread:$0]  %s179_s1, 256, %s16_s10, [#allocation5], %s144_s12, %s144_s12, %s145_s13  }
   0xd   :  { %139 = dma.done.wait [#allocation5], 256  }
   0xe   :  { %140 = vsyncadd [#allocation5], 4294967040  ;;  %v26_v0 = vlaneseq  ;;  %s39_s18 = smul.u32 2654435769, %s178_s0  ;;  %v65_v22 = vld [vmem:[#allocation4] sm:$0xff]  ;;  %v66_v25 = vld [vmem:[#allocation4 + $0x8] sm:$0xff] }
   0xf   :  { %v67_v27 = vsub.f32 1.0, %v65_v22  ;;  %v68_v31 = vsub.f32 1.0, %v66_v25  ;;  %s146_s0 = smov [#allocation7]   ;;  %v147_v39 = vmov -1.0  }
  0x10   :  { %v27_v1 = vshrl.u32 %v26_v0, 7  ;;  %v30_v2 = vand.u32 127, %v26_v0  ;;  %v40_v5 = vstv %s39_s18  ;;  %s82_s1 = sshll.u32 %s146_s0, 4  ;;  %s83_s1 = int_to_ptr.vmem [resolvable:$true] %s82_s1 }
  0x11   :  { %v69_v33 = vmul.f32 0.5, %v67_v27  ;;  %v70_v37 = vmul.f32 0.5, %v68_v31  ;;  %s119_s19 = scalar_lea.vmem %s83_s1, 256  ;;  %p124_p6 = scmp.lt.s32.totalorder %s83_s1, %s83_s1 }
  0x12   :  { %v31_v3 = vmul.u32 128, %v27_v1  ;;  %v28_v4 = vadd.s32 8, %v27_v1  ;;  %p120_p5 = scmp.ne.s32.totalorder %s83_s1, %s119_s19  ;;  %p125_p7 = scmp.lt.s32.totalorder %s119_s19, %s119_s19 }
  0x14   :  { %v36_v6 = vadd.s32 %v31_v3, %v30_v2  ;;  %v32_v7 = vmul.u32 128, %v28_v4  ;;  %p126_p8 = por %p125_p7, %p124_p6 }
  0x16   :  { %v41_v8 = vadd.s32 %v40_v5, %v36_v6  ;;  %v37_v9 = vadd.s32 %v32_v7, %v30_v2  ;;  %p127_p9 = pnand %p126_p8, %p120_p5 }
  0x18   :  { %v43_v10 = vshrl.u32 %v41_v8, 16  ;;  %v42_v11 = vadd.s32 %v40_v5, %v37_v9 }
  0x1a   :  { %v45_v12 = vxor.u32 %v43_v10, %v41_v8  ;;  %v44_v13 = vshrl.u32 %v42_v11, 16 }
  0x1c   :  { %v47_v14 = vmul.u32 2146121005, %v45_v12  ;;  %v46_v15 = vxor.u32 %v44_v13, %v42_v11 }
  0x1e   :  { %v49_v16 = vshrl.u32 %v47_v14, 15  ;;  %v48_v17 = vmul.u32 2146121005, %v46_v15 }
  0x20   :  { %v51_v18 = vxor.u32 %v49_v16, %v47_v14  ;;  %v50_v19 = vshrl.u32 %v48_v17, 15 }
  0x22   :  { %v53_v20 = vmul.u32 2221713035, %v51_v18  ;;  %v52_v21 = vxor.u32 %v50_v19, %v48_v17 }
  0x24   :  { %v55_v23 = vshrl.u32 %v53_v20, 16  ;;  %v54_v24 = vmul.u32 2221713035, %v52_v21 }
  0x26   :  { %v57_v26 = vxor.u32 %v55_v23, %v53_v20  ;;  %v56_v28 = vshrl.u32 %v54_v24, 16 }
  0x28   :  { %v59_v29 = vshrl.u32 %v57_v26, 9  ;;  %v58_v30 = vxor.u32 %v56_v28, %v54_v24 }
  0x2a   :  { %v61_v32 = vcvt.s32.f32 %v59_v29  ;;  %v60_v34 = vshrl.u32 %v58_v30, 9 }
  0x2c   :  { %v63_v35 = vmul.f32 1.1920929e-07, %v61_v32  ;;  %v62_v36 = vcvt.s32.f32 %v60_v34 }
  0x2e   :  { %vm71_vm0 = vcmp.le.f32.partialorder %v69_v33, %v63_v35  ;;  %v64_v38 = vmul.f32 1.1920929e-07, %v62_v36 }
  0x2f   :  { %v73_v40 = vsel %vm71_vm0, 1.0, %v147_v39 }
  0x30   :  { %75 = vst [vmem:[#allocation7] sm:$0xff] %v73_v40  ;;  %vm72_vm1 = vcmp.le.f32.partialorder %v70_v37, %v64_v38 }
  0x31   :  { %v74_v41 = vsel %vm72_vm1, 1.0, %v147_v39 }
  0x32   :  { %76 = vst [vmem:[#allocation7 + $0x8] sm:$0xff] %v74_v41 }
  0x33   :  { %130 = shalt.err (!%p127_p9)
}
  0x34   :  { %88 = dma.vmem_to_hbm [thread:$0]  %s83_s1, 256, %s180_s2, [#allocation6], %s144_s12, %s144_s12, %s145_s13  }
  0x35   :  { %141 = dma.done.wait [#allocation6], 256  }
  0x36   :  { %142 = vsyncadd [#allocation6], 4294967040 }
  0x37   :  { %92 = vsyncpa [#allocation5], 1 }
  0x38   :  { %93 = vsyncpa [#allocation6], 1 }

</bundles_post_ra>
